<compile_context>
chip_gen: v6e
topology: v6e:2x2x1
jax: 0.10.0
libtpu: 0.0.40
codegen_flags: <defaults>
</compile_context>

<pallas_src>
import functools

import jax
import jax.numpy as jnp
from jax.experimental import pallas as pl
from jax.experimental.pallas import tpu as pltpu


def _resolve_shape(shape, total):
    """Resolve a single -1 wildcard, torch.view style."""
    shape = tuple(int(s) for s in shape)
    if shape.count(-1) > 1:
        raise ValueError("only one dimension can be -1")
    if -1 in shape:
        known = 1
        for s in shape:
            if s != -1:
                known *= s
        if known == 0 or total % known != 0:
            raise ValueError(f"cannot view size {total} as shape {shape}")
        shape = tuple(total // known if s == -1 else s for s in shape)
    prod = 1
    for s in shape:
        prod *= s
    if prod != total:
        raise ValueError(f"cannot view size {total} as shape {shape}")
    return shape


def _dma_copy_kernel(x_hbm_ref, o_hbm_ref, sem):
    # Single whole-array HBM->HBM DMA: issue and wait. No VMEM round-trip,
    # no grid, no vector load/store bundles on the TensorCore.
    copy = pltpu.make_async_copy(x_hbm_ref, o_hbm_ref, sem)
    copy.start()
    copy.wait()


@functools.partial(jax.jit, static_argnums=(1,))
def _view_materialized(x, out_shape):
    """Materialized (fresh-buffer) view: one HBM->HBM DMA, then a
    metadata-only reshape to the requested shape."""
    if x.size == 0:
        return jnp.reshape(x, out_shape)
    copied = pl.pallas_call(
        _dma_copy_kernel,
        out_shape=jax.ShapeDtypeStruct(x.shape, x.dtype),
        in_specs=[pl.BlockSpec(memory_space=pl.ANY)],
        out_specs=pl.BlockSpec(memory_space=pl.ANY),
        scratch_shapes=[pltpu.SemaphoreType.DMA],
    )(x)
    return jnp.reshape(copied, out_shape)


class View:
    """JAX/Pallas equivalent of the PyTorch `View` module.

    By default this is a metadata-only reshape (exactly what a contiguous
    torch .view() is). Pass materialize=True to force a fresh HBM buffer via
    a single-DMA Pallas copy kernel.
    """

    def __init__(self, *shape, materialize=False):
        self.shape = shape
        self.materialize = materialize

    def __call__(self, x):
        out_shape = _resolve_shape(self.shape, x.size)
        if self.materialize:
            return _view_materialized(x, out_shape)
        # Fast path: contiguous view == row-major reshape, metadata-only.
        return jnp.reshape(x, out_shape)


if __name__ == "__main__":
    key = jax.random.PRNGKey(0)
    k0, k1 = jax.random.split(key, 2)

    # ---- Default (metadata-only) path: mirrors the PyTorch docstring ----
    x = jax.random.normal(k0, (2, 4, 16, 16), dtype=jnp.float32)
    y1 = View(-1)(x)                  # -> (2048,)
    y2 = View(2, -1)(x)               # -> (2, 1024)
    y3 = View(8, 16, 16)(y1)          # -> (8, 16, 16)

    # ---- Materialized path: exercises the Pallas HBM->HBM DMA kernel ----
    z1 = View(-1, materialize=True)(x)            # -> (2048,)
    z2 = View(2, -1, materialize=True)(x)         # -> (2, 1024)

    xb = jax.random.normal(k1, (2, 8, 16, 32), dtype=jnp.bfloat16)
    z3 = View(2, 8, -1, materialize=True)(xb)     # -> (2, 8, 512)

    jax.block_until_ready((y1, y2, y3, z1, z2, z3))

    assert y1.shape == (2048,)
    assert y2.shape == (2, 1024)
    assert y3.shape == (8, 16, 16)
    assert z1.shape == (2048,)
    assert z2.shape == (2, 1024)
    assert z3.shape == (2, 8, 512)

    assert jnp.array_equal(y1, x.reshape(-1))
    assert jnp.array_equal(y2, x.reshape(2, -1))
    assert jnp.array_equal(y3, x.reshape(-1).reshape(8, 16, 16))
    assert jnp.array_equal(z1, x.reshape(-1))
    assert jnp.array_equal(z2, x.reshape(2, -1))
    assert jnp.array_equal(z3, xb.reshape(2, 8, -1))

    print("KERNEL_OK")
</pallas_src>

<mosaic_0001>
module attributes {stable_mosaic.version = 11 : i64} {
  func.func @_dma_copy_kernel(%arg0: memref<2x4x16x16xf32, #tpu.memory_space<any>>, %arg1: memref<2x4x16x16xf32, #tpu.memory_space<any>>, %arg2: memref<!tpu.dma_semaphore, #tpu.memory_space<semaphore_mem>>) attributes {dimension_semantics = [], scalar_prefetch = 0 : i64, scratch_operands = 1 : i64, tpu.core_type = #tpu.core_type<tc>} {
    tpu.enqueue_dma source(%arg0 : memref<2x4x16x16xf32, #tpu.memory_space<any>>) target(%arg1 : memref<2x4x16x16xf32, #tpu.memory_space<any>>) target_semaphore(%arg2 : memref<!tpu.dma_semaphore, #tpu.memory_space<semaphore_mem>>)
    tpu.wait_dma2 semaphore(%arg2 : memref<!tpu.dma_semaphore, #tpu.memory_space<semaphore_mem>>) src(%arg0 : memref<2x4x16x16xf32, #tpu.memory_space<any>>) dst(%arg1 : memref<2x4x16x16xf32, #tpu.memory_space<any>>)
    return
  }
}

</mosaic_0001>

<bundles_post_ra>
// kernel: _view_materialized.1
= control target key start
LH: loop header
LB: loop body
LE: loop exit
PB: predicated region body
PF: predicated region fallthrough
CT: control target
= control target key end

     0   :  { %s67_s0 = inlined_call_operand.hbm [shape: f32[2,4,16,16], index: 0, kind: input, shape index: {}]   ;;  %s68_s1 = inlined_call_operand.vmem [shape: f32[2,4,16,16], index: 1, kind: output, shape index: {}]  }
   0x1   :  { %s13_s8 = sshll.u32 %s68_s1, 4  ;;  %s14_s8 = int_to_ptr.vmem [resolvable:$true] %s13_s8 }
   0x2   :  { %s37_s9 = scalar_lea.vmem %s14_s8, 2048  ;;  %p42_p1 = scmp.lt.s32.totalorder %s14_s8, %s14_s8 }
   0x3   :  { %p38_p0 = scmp.ne.s32.totalorder %s14_s8, %s37_s9  ;;  %p43_p2 = scmp.lt.s32.totalorder %s37_s9, %s37_s9 }
   0x5   :  { %p44_p3 = por %p43_p2, %p42_p1 }
   0x7   :  { %p45_p4 = pnand %p44_p3, %p38_p0 }
   0x9   :  { %48 = shalt.err (!%p45_p4)  }
   0xa   :  { %16 = dma.hbm_to_vmem [thread:$0]  %s67_s0, 2048, %s14_s8, [#allocation2] }
   0xb   :  { %49 = dma.done.wait [#allocation2], 2048 }
   0xc   :  { %50 = vsyncadd [#allocation2], 4294965248 }
   0xd   :  { %22 = vsyncmov [#allocation2] }
  0x10   :  { %s23_s12 = vpop.sfrf %22 }
  0x11   :  { %p28_p5 = scmp.ne.s32.totalorder %s23_s12, 0 }
  0x13   :  { %27 = shalt.err (%p28_p5)  }

</bundles_post_ra>
